<compile_context>
chip_gen: v5e
topology: v5e:2x2
jax: 0.10.0
libtpu: 0.0.40
codegen_flags: <defaults>
</compile_context>

<pallas_src>
import math

import jax
import jax.numpy as jnp
from jax.experimental import pallas as pl
from jax.experimental.pallas import tpu as pltpu


def _positional_encoding(max_len, d_model):
    pos = jnp.arange(max_len, dtype=jnp.float32)[:, None]          # (max_len, 1)
    i2 = jnp.arange(0, d_model, 2, dtype=jnp.float32)              # (d_model/2,)
    angle = pos / jnp.power(jnp.float32(10000.0), i2 / d_model)    # (max_len, d/2)
    enc = jnp.zeros((max_len, d_model), dtype=jnp.float32)
    enc = enc.at[:, 0::2].set(jnp.sin(angle))
    enc = enc.at[:, 1::2].set(jnp.cos(angle))
    return enc


def base_transformer_forward(x, params, *, max_len):
    """Pallas TPU forward of Base_Transformer.

    x: (batch, seq_len, input_size) with seq_len == input_size (module constraint
    from `self.mlp = nn.Linear(input_size * 4, 1)` applied to e1.reshape(B, -1)).
    Returns (batch, 1).
    """
    B, L, d_in = x.shape
    d = params["w_init"].shape[1]
    assert params["w_mlp"].shape[0] == L * d, (
        "Base_Transformer requires seq_len == input_size for the final MLP")
    # NOTE: the whole batch is handled in one grid step; for very large B you would
    # tile the batch dimension over the grid instead (everything here is tiny).

    pos = _positional_encoding(max_len, d)[:L]                       # (L, d)
    pos_t = jnp.tile(pos, (B, 1))                                    # (B*L, d)
    wm_r = params["w_mlp"].reshape(L, d)    # row-major match of per-batch flatten
    x2 = x.reshape(B * L, d_in)                                      # (B*L, d_in)

    inv_sqrt_d = 1.0 / math.sqrt(d)

    def kernel(x_ref, pos_ref,
               wi_ref, bi_ref,
               wq_ref, bq_ref, wk_ref, bk_ref, wv_ref, bv_ref,
               wc_ref, bc_ref,
               g_ref, be_ref,
               wm_ref, bm_ref,
               out_ref):
        f32 = jnp.float32
        xi = x_ref[...]                                              # (B*L, d_in)

        # initial = nn.Linear(input_size, d_model); TransformerEmbedding adds the
        # positional encoding (nn.Dropout has p=0 -> identity).
        xe = (jnp.dot(xi, wi_ref[...], preferred_element_type=f32)
              + bi_ref[...] + pos_ref[...])                          # (B*L, d)

        # MultiHeadAttention with n_head == 1 (d_tensor == d_model).
        q = jnp.dot(xe, wq_ref[...], preferred_element_type=f32) + bq_ref[...]
        k = jnp.dot(xe, wk_ref[...], preferred_element_type=f32) + bk_ref[...]
        v = jnp.dot(xe, wv_ref[...], preferred_element_type=f32) + bv_ref[...]

        q3 = q.reshape(B, L, d)
        k3 = k.reshape(B, L, d)
        v3 = v.reshape(B, L, d)

        # score = q @ k^T / sqrt(d): batched, contracting last dims (no transpose).
        s = jax.lax.dot_general(
            q3, k3, (((2,), (2,)), ((0,), (0,))),
            preferred_element_type=f32) * jnp.float32(inv_sqrt_d)    # (B, L, L)

        # softmax over the last dim (no mask); 1/sum applied to the small (B, L, d)
        # result instead of the (B, L, L) matrix.
        s_max = jnp.max(s, axis=-1, keepdims=True)
        p = jnp.exp(s - s_max)                                       # (B, L, L)
        denom = jnp.sum(p, axis=-1, keepdims=True)                   # (B, L, 1)
        a3 = jax.lax.dot_general(
            p, v3, (((2,), (1,)), ((0,), (0,))),
            preferred_element_type=f32)                              # (B, L, d)
        a3 = a3 * pl.reciprocal(denom, approx=False)                 # exact, for parity

        # w_concat projection (head concat is a no-op for n_head == 1).
        a = a3.reshape(B * L, d)
        a = jnp.dot(a, wc_ref[...], preferred_element_type=f32) + bc_ref[...]

        # residual + LayerNorm (biased variance, eps inside the sqrt).
        y = a + xe
        mean = jnp.mean(y, axis=-1, keepdims=True)
        var = jnp.mean((y - mean) * (y - mean), axis=-1, keepdims=True)
        e1 = (g_ref[...] * ((y - mean) * jax.lax.rsqrt(var + jnp.float32(1e-12)))
              + be_ref[...])                                         # (B*L, d)

        # final mlp on the per-batch flattened (L*d,) vector:
        #   flat @ W_mlp + b  ==  sum over (L, d) of (e1 * W_mlp.reshape(L, d)) + b
        prod = e1.reshape(B, L, d) * wm_ref[...][None]               # (B, L, d)
        row = jnp.sum(prod, axis=-1)                                 # (B, L)
        tot = jnp.sum(row, axis=-1, keepdims=True) + bm_ref[...]     # (B, 1)
        out_ref[...] = tot.astype(out_ref.dtype)

    def full(shape):  # full-array block, single grid step -> DMA'd exactly once
        nd = len(shape)
        return pl.BlockSpec(shape, lambda i, _nd=nd: (0,) * _nd)

    in_specs = [
        full((B * L, d_in)),                    # x (flattened batch*seq)
        full((B * L, d)),                       # positional encoding (pre-tiled)
        full((d_in, d)), full((1, d)),          # w_init, b_init
        full((d, d)), full((1, d)),             # w_q, b_q
        full((d, d)), full((1, d)),             # w_k, b_k
        full((d, d)), full((1, d)),             # w_v, b_v
        full((d, d)), full((1, d)),             # w_concat, b_concat
        full((1, d)), full((1, d)),             # gamma, beta
        full((L, d)), full((1, 1)),             # w_mlp (reshaped), b_mlp
    ]

    out = pl.pallas_call(
        kernel,
        grid=(1,),
        in_specs=in_specs,
        out_specs=full((B, 1)),
        out_shape=jax.ShapeDtypeStruct((B, 1), x.dtype),
        compiler_params=pltpu.CompilerParams(dimension_semantics=("arbitrary",)),
    )(x2, pos_t,
      params["w_init"], params["b_init"],
      params["w_q"], params["b_q"],
      params["w_k"], params["b_k"],
      params["w_v"], params["b_v"],
      params["w_concat"], params["b_concat"],
      params["gamma"], params["beta"],
      wm_r, params["b_mlp"])
    return out


def _reference_forward(x, params, *, max_len):
    """Pure-JAX reference of Base_Transformer.forward (high-precision matmuls)."""
    hp = jax.lax.Precision.HIGHEST
    B, L, _ = x.shape
    d_model = params["w_init"].shape[1]
    pos = _positional_encoding(max_len, d_model)[:L]

    x0 = (jnp.einsum("bld,de->ble", x, params["w_init"], precision=hp)
          + params["b_init"] + pos[None])
    q = jnp.einsum("bld,de->ble", x0, params["w_q"], precision=hp) + params["b_q"]
    k = jnp.einsum("bld,de->ble", x0, params["w_k"], precision=hp) + params["b_k"]
    v = jnp.einsum("bld,de->ble", x0, params["w_v"], precision=hp) + params["b_v"]

    score = jnp.einsum("bld,bmd->blm", q, k, precision=hp) / math.sqrt(d_model)
    score = jax.nn.softmax(score, axis=-1)
    attn = jnp.einsum("blm,bmd->bld", score, v, precision=hp)
    attn = (jnp.einsum("bld,de->ble", attn, params["w_concat"], precision=hp)
            + params["b_concat"])

    y = attn + x0
    mean = y.mean(-1, keepdims=True)
    var = ((y - mean) ** 2).mean(-1, keepdims=True)
    e1 = params["gamma"] * (y - mean) / jnp.sqrt(var + 1e-12) + params["beta"]

    flat = e1.reshape(B, L * d_model)
    return jnp.dot(flat, params["w_mlp"], precision=hp) + params["b_mlp"]


def init_params(key, input_size, seq_len, d_model=4):
    def linear(k, fan_in, fan_out):
        kw, kb = jax.random.split(k)
        bound = 1.0 / math.sqrt(fan_in)
        w = jax.random.uniform(kw, (fan_in, fan_out), jnp.float32, -bound, bound)
        b = jax.random.uniform(kb, (1, fan_out), jnp.float32, -bound, bound)
        return w, b

    ks = jax.random.split(key, 6)
    w_init, b_init = linear(ks[0], input_size, d_model)
    w_q, b_q = linear(ks[1], d_model, d_model)
    w_k, b_k = linear(ks[2], d_model, d_model)
    w_v, b_v = linear(ks[3], d_model, d_model)
    w_concat, b_concat = linear(ks[4], d_model, d_model)
    w_mlp, b_mlp = linear(ks[5], seq_len * d_model, 1)   # (L*d, 1), (1, 1)
    return dict(
        w_init=w_init, b_init=b_init,
        w_q=w_q, b_q=b_q, w_k=w_k, b_k=b_k, w_v=w_v, b_v=b_v,
        w_concat=w_concat, b_concat=b_concat,
        gamma=jnp.ones((1, d_model), jnp.float32),
        beta=jnp.zeros((1, d_model), jnp.float32),
        w_mlp=w_mlp, b_mlp=b_mlp,
    )


if __name__ == "__main__":
    batch, input_size, max_len, d_model = 2, 32, 64, 4
    seq_len = input_size  # Base_Transformer's final MLP forces seq_len == input_size

    key = jax.random.PRNGKey(0)
    kx, kp = jax.random.split(key)
    x = jax.random.normal(kx, (batch, seq_len, input_size), dtype=jnp.float32)
    params = init_params(kp, input_size, seq_len, d_model=d_model)

    out = base_transformer_forward(x, params, max_len=max_len)
    jax.block_until_ready(out)

    ref = _reference_forward(x, params, max_len=max_len)
    assert out.shape == (batch, 1)
    assert jnp.allclose(out, ref, atol=1e-4, rtol=1e-4), (out, ref)

    print("KERNEL_OK")
</pallas_src>

<mosaic_0001>
module attributes {stable_mosaic.version = 11 : i64} {
  func.func @kernel(%arg0: i32, %arg1: memref<64x32xf32, #tpu.memory_space<vmem>>, %arg2: memref<64x4xf32, #tpu.memory_space<vmem>>, %arg3: memref<32x4xf32, #tpu.memory_space<vmem>>, %arg4: memref<1x4xf32, #tpu.memory_space<vmem>>, %arg5: memref<4x4xf32, #tpu.memory_space<vmem>>, %arg6: memref<1x4xf32, #tpu.memory_space<vmem>>, %arg7: memref<4x4xf32, #tpu.memory_space<vmem>>, %arg8: memref<1x4xf32, #tpu.memory_space<vmem>>, %arg9: memref<4x4xf32, #tpu.memory_space<vmem>>, %arg10: memref<1x4xf32, #tpu.memory_space<vmem>>, %arg11: memref<4x4xf32, #tpu.memory_space<vmem>>, %arg12: memref<1x4xf32, #tpu.memory_space<vmem>>, %arg13: memref<1x4xf32, #tpu.memory_space<vmem>>, %arg14: memref<1x4xf32, #tpu.memory_space<vmem>>, %arg15: memref<32x4xf32, #tpu.memory_space<vmem>>, %arg16: memref<1x1xf32, #tpu.memory_space<vmem>>, %arg17: memref<2x1xf32, #tpu.memory_space<vmem>>) attributes {dimension_semantics = [#tpu.dimension_semantics<arbitrary>], iteration_bounds = array<i64: 1>, scalar_prefetch = 0 : i64, scratch_operands = 0 : i64, tpu.core_type = #tpu.core_type<tc>, window_params = [{pipeline_mode = #tpu.pipeline_mode<synchronous>, transform_indices = @transform_0, window_bounds = array<i64: 64, 32>}, {pipeline_mode = #tpu.pipeline_mode<synchronous>, transform_indices = @transform_1, window_bounds = array<i64: 64, 4>}, {pipeline_mode = #tpu.pipeline_mode<synchronous>, transform_indices = @transform_2, window_bounds = array<i64: 32, 4>}, {pipeline_mode = #tpu.pipeline_mode<synchronous>, transform_indices = @transform_3, window_bounds = array<i64: 1, 4>}, {pipeline_mode = #tpu.pipeline_mode<synchronous>, transform_indices = @transform_4, window_bounds = array<i64: 4, 4>}, {pipeline_mode = #tpu.pipeline_mode<synchronous>, transform_indices = @transform_5, window_bounds = array<i64: 1, 4>}, {pipeline_mode = #tpu.pipeline_mode<synchronous>, transform_indices = @transform_6, window_bounds = array<i64: 4, 4>}, {pipeline_mode = #tpu.pipeline_mode<synchronous>, transform_indices = @transform_7, window_bounds = array<i64: 1, 4>}, {pipeline_mode = #tpu.pipeline_mode<synchronous>, transform_indices = @transform_8, window_bounds = array<i64: 4, 4>}, {pipeline_mode = #tpu.pipeline_mode<synchronous>, transform_indices = @transform_9, window_bounds = array<i64: 1, 4>}, {pipeline_mode = #tpu.pipeline_mode<synchronous>, transform_indices = @transform_10, window_bounds = array<i64: 4, 4>}, {pipeline_mode = #tpu.pipeline_mode<synchronous>, transform_indices = @transform_11, window_bounds = array<i64: 1, 4>}, {pipeline_mode = #tpu.pipeline_mode<synchronous>, transform_indices = @transform_12, window_bounds = array<i64: 1, 4>}, {pipeline_mode = #tpu.pipeline_mode<synchronous>, transform_indices = @transform_13, window_bounds = array<i64: 1, 4>}, {pipeline_mode = #tpu.pipeline_mode<synchronous>, transform_indices = @transform_14, window_bounds = array<i64: 32, 4>}, {pipeline_mode = #tpu.pipeline_mode<synchronous>, transform_indices = @transform_15, window_bounds = array<i64: 1, 1>}, {pipeline_mode = #tpu.pipeline_mode<synchronous>, transform_indices = @transform_16, window_bounds = array<i64: 2, 1>}]} {
    %c0 = arith.constant 0 : index
    %c0_0 = arith.constant 0 : index
    %0 = vector.load %arg1[%c0, %c0_0] : memref<64x32xf32, #tpu.memory_space<vmem>>, vector<64x32xf32>
    %c0_1 = arith.constant 0 : index
    %c0_2 = arith.constant 0 : index
    %1 = vector.load %arg3[%c0_1, %c0_2] : memref<32x4xf32, #tpu.memory_space<vmem>>, vector<32x4xf32>
    %cst = arith.constant dense<0.000000e+00> : vector<64x4xf32>
    %2 = tpu.matmul %0, %1, %cst {dimension_numbers = #tpu.dot_dimension_numbers<[1], [0], [0], [1], [0, 0, 1, 1], [], []>} : vector<64x32xf32>, vector<32x4xf32>, vector<64x4xf32> -> vector<64x4xf32>
    %c0_3 = arith.constant 0 : index
    %c0_4 = arith.constant 0 : index
    %3 = vector.load %arg4[%c0_3, %c0_4] : memref<1x4xf32, #tpu.memory_space<vmem>>, vector<1x4xf32>
    %4 = vector.broadcast %3 : vector<1x4xf32> to vector<64x4xf32>
    %5 = arith.addf %2, %4 : vector<64x4xf32>
    %c0_5 = arith.constant 0 : index
    %c0_6 = arith.constant 0 : index
    %6 = vector.load %arg2[%c0_5, %c0_6] : memref<64x4xf32, #tpu.memory_space<vmem>>, vector<64x4xf32>
    %7 = arith.addf %5, %6 : vector<64x4xf32>
    %c0_7 = arith.constant 0 : index
    %c0_8 = arith.constant 0 : index
    %8 = vector.load %arg5[%c0_7, %c0_8] : memref<4x4xf32, #tpu.memory_space<vmem>>, vector<4x4xf32>
    %cst_9 = arith.constant dense<0.000000e+00> : vector<64x4xf32>
    %9 = tpu.matmul %7, %8, %cst_9 {dimension_numbers = #tpu.dot_dimension_numbers<[1], [0], [0], [1], [0, 0, 1, 1], [], []>} : vector<64x4xf32>, vector<4x4xf32>, vector<64x4xf32> -> vector<64x4xf32>
    %c0_10 = arith.constant 0 : index
    %c0_11 = arith.constant 0 : index
    %10 = vector.load %arg6[%c0_10, %c0_11] : memref<1x4xf32, #tpu.memory_space<vmem>>, vector<1x4xf32>
    %11 = vector.broadcast %10 : vector<1x4xf32> to vector<64x4xf32>
    %12 = arith.addf %9, %11 : vector<64x4xf32>
    %c0_12 = arith.constant 0 : index
    %c0_13 = arith.constant 0 : index
    %13 = vector.load %arg7[%c0_12, %c0_13] : memref<4x4xf32, #tpu.memory_space<vmem>>, vector<4x4xf32>
    %cst_14 = arith.constant dense<0.000000e+00> : vector<64x4xf32>
    %14 = tpu.matmul %7, %13, %cst_14 {dimension_numbers = #tpu.dot_dimension_numbers<[1], [0], [0], [1], [0, 0, 1, 1], [], []>} : vector<64x4xf32>, vector<4x4xf32>, vector<64x4xf32> -> vector<64x4xf32>
    %c0_15 = arith.constant 0 : index
    %c0_16 = arith.constant 0 : index
    %15 = vector.load %arg8[%c0_15, %c0_16] : memref<1x4xf32, #tpu.memory_space<vmem>>, vector<1x4xf32>
    %16 = vector.broadcast %15 : vector<1x4xf32> to vector<64x4xf32>
    %17 = arith.addf %14, %16 : vector<64x4xf32>
    %c0_17 = arith.constant 0 : index
    %c0_18 = arith.constant 0 : index
    %18 = vector.load %arg9[%c0_17, %c0_18] : memref<4x4xf32, #tpu.memory_space<vmem>>, vector<4x4xf32>
    %cst_19 = arith.constant dense<0.000000e+00> : vector<64x4xf32>
    %19 = tpu.matmul %7, %18, %cst_19 {dimension_numbers = #tpu.dot_dimension_numbers<[1], [0], [0], [1], [0, 0, 1, 1], [], []>} : vector<64x4xf32>, vector<4x4xf32>, vector<64x4xf32> -> vector<64x4xf32>
    %c0_20 = arith.constant 0 : index
    %c0_21 = arith.constant 0 : index
    %20 = vector.load %arg10[%c0_20, %c0_21] : memref<1x4xf32, #tpu.memory_space<vmem>>, vector<1x4xf32>
    %21 = vector.broadcast %20 : vector<1x4xf32> to vector<64x4xf32>
    %22 = arith.addf %19, %21 : vector<64x4xf32>
    %23 = vector.shape_cast %12 : vector<64x4xf32> to vector<2x32x4xf32>
    %24 = vector.shape_cast %17 : vector<64x4xf32> to vector<2x32x4xf32>
    %25 = vector.shape_cast %22 : vector<64x4xf32> to vector<2x32x4xf32>
    %cst_22 = arith.constant dense<0.000000e+00> : vector<2x32x32xf32>
    %26 = tpu.matmul %23, %24, %cst_22 {dimension_numbers = #tpu.dot_dimension_numbers<[2], [2], [1], [1], [0, 0, 0, 1, 1, 1], [0], [0]>} : vector<2x32x4xf32>, vector<2x32x4xf32>, vector<2x32x32xf32> -> vector<2x32x32xf32>
    %cst_23 = arith.constant 5.000000e-01 : f32
    %27 = vector.broadcast %cst_23 : f32 to vector<2x32x32xf32>
    %28 = arith.mulf %26, %27 : vector<2x32x32xf32>
    %cst_24 = arith.constant dense<0xFF800000> : vector<2x32xf32>
    %29 = vector.multi_reduction <maximumf>, %28, %cst_24 [2] : vector<2x32x32xf32> to vector<2x32xf32>
    %30 = vector.shape_cast %29 : vector<2x32xf32> to vector<2x32x1xf32>
    %31 = vector.broadcast %30 : vector<2x32x1xf32> to vector<2x32x32xf32>
    %32 = arith.subf %28, %31 : vector<2x32x32xf32>
    %33 = math.exp %32 : vector<2x32x32xf32>
    %cst_25 = arith.constant dense<0.000000e+00> : vector<2x32xf32>
    %34 = vector.multi_reduction <add>, %33, %cst_25 [2] : vector<2x32x32xf32> to vector<2x32xf32>
    %35 = vector.shape_cast %34 : vector<2x32xf32> to vector<2x32x1xf32>
    %cst_26 = arith.constant dense<0.000000e+00> : vector<2x32x4xf32>
    %36 = tpu.matmul %33, %25, %cst_26 {dimension_numbers = #tpu.dot_dimension_numbers<[2], [1], [1], [2], [0, 0, 0, 1, 1, 2], [0], [0]>} : vector<2x32x32xf32>, vector<2x32x4xf32>, vector<2x32x4xf32> -> vector<2x32x4xf32>
    %37 = tpu.reciprocal %35 : vector<2x32x1xf32> -> vector<2x32x1xf32>
    %38 = vector.broadcast %37 : vector<2x32x1xf32> to vector<2x32x4xf32>
    %39 = arith.mulf %36, %38 : vector<2x32x4xf32>
    %40 = vector.shape_cast %39 : vector<2x32x4xf32> to vector<64x4xf32>
    %c0_27 = arith.constant 0 : index
    %c0_28 = arith.constant 0 : index
    %41 = vector.load %arg11[%c0_27, %c0_28] : memref<4x4xf32, #tpu.memory_space<vmem>>, vector<4x4xf32>
    %cst_29 = arith.constant dense<0.000000e+00> : vector<64x4xf32>
    %42 = tpu.matmul %40, %41, %cst_29 {dimension_numbers = #tpu.dot_dimension_numbers<[1], [0], [0], [1], [0, 0, 1, 1], [], []>} : vector<64x4xf32>, vector<4x4xf32>, vector<64x4xf32> -> vector<64x4xf32>
    %c0_30 = arith.constant 0 : index
    %c0_31 = arith.constant 0 : index
    %43 = vector.load %arg12[%c0_30, %c0_31] : memref<1x4xf32, #tpu.memory_space<vmem>>, vector<1x4xf32>
    %44 = vector.broadcast %43 : vector<1x4xf32> to vector<64x4xf32>
    %45 = arith.addf %42, %44 : vector<64x4xf32>
    %46 = arith.addf %45, %7 : vector<64x4xf32>
    %cst_32 = arith.constant dense<0.000000e+00> : vector<64xf32>
    %47 = vector.multi_reduction <add>, %46, %cst_32 [1] : vector<64x4xf32> to vector<64xf32>
    %48 = vector.shape_cast %47 : vector<64xf32> to vector<64x1xf32>
    %cst_33 = arith.constant 4.000000e+00 : f32
    %49 = vector.broadcast %cst_33 : f32 to vector<64x1xf32>
    %50 = arith.divf %48, %49 : vector<64x1xf32>
    %51 = vector.broadcast %50 : vector<64x1xf32> to vector<64x4xf32>
    %52 = arith.subf %46, %51 : vector<64x4xf32>
    %53 = vector.broadcast %50 : vector<64x1xf32> to vector<64x4xf32>
    %54 = arith.subf %46, %53 : vector<64x4xf32>
    %55 = arith.mulf %52, %54 : vector<64x4xf32>
    %cst_34 = arith.constant dense<0.000000e+00> : vector<64xf32>
    %56 = vector.multi_reduction <add>, %55, %cst_34 [1] : vector<64x4xf32> to vector<64xf32>
    %57 = vector.shape_cast %56 : vector<64xf32> to vector<64x1xf32>
    %cst_35 = arith.constant 4.000000e+00 : f32
    %58 = vector.broadcast %cst_35 : f32 to vector<64x1xf32>
    %59 = arith.divf %57, %58 : vector<64x1xf32>
    %c0_36 = arith.constant 0 : index
    %c0_37 = arith.constant 0 : index
    %60 = vector.load %arg13[%c0_36, %c0_37] : memref<1x4xf32, #tpu.memory_space<vmem>>, vector<1x4xf32>
    %61 = vector.broadcast %50 : vector<64x1xf32> to vector<64x4xf32>
    %62 = arith.subf %46, %61 : vector<64x4xf32>
    %cst_38 = arith.constant 9.99999996E-13 : f32
    %63 = vector.broadcast %cst_38 : f32 to vector<64x1xf32>
    %64 = arith.addf %59, %63 : vector<64x1xf32>
    %65 = math.rsqrt %64 : vector<64x1xf32>
    %66 = vector.broadcast %65 : vector<64x1xf32> to vector<64x4xf32>
    %67 = arith.mulf %62, %66 : vector<64x4xf32>
    %68 = vector.broadcast %60 : vector<1x4xf32> to vector<64x4xf32>
    %69 = arith.mulf %68, %67 : vector<64x4xf32>
    %c0_39 = arith.constant 0 : index
    %c0_40 = arith.constant 0 : index
    %70 = vector.load %arg14[%c0_39, %c0_40] : memref<1x4xf32, #tpu.memory_space<vmem>>, vector<1x4xf32>
    %71 = vector.broadcast %70 : vector<1x4xf32> to vector<64x4xf32>
    %72 = arith.addf %69, %71 : vector<64x4xf32>
    %73 = vector.shape_cast %72 : vector<64x4xf32> to vector<2x32x4xf32>
    %c0_41 = arith.constant 0 : index
    %c0_42 = arith.constant 0 : index
    %74 = vector.load %arg15[%c0_41, %c0_42] : memref<32x4xf32, #tpu.memory_space<vmem>>, vector<32x4xf32>
    %75 = vector.shape_cast %74 : vector<32x4xf32> to vector<1x32x4xf32>
    %76 = vector.broadcast %75 : vector<1x32x4xf32> to vector<2x32x4xf32>
    %77 = arith.mulf %73, %76 : vector<2x32x4xf32>
    %cst_43 = arith.constant dense<0.000000e+00> : vector<2x32xf32>
    %78 = vector.multi_reduction <add>, %77, %cst_43 [2] : vector<2x32x4xf32> to vector<2x32xf32>
    %cst_44 = arith.constant dense<0.000000e+00> : vector<2xf32>
    %79 = vector.multi_reduction <add>, %78, %cst_44 [1] : vector<2x32xf32> to vector<2xf32>
    %80 = vector.shape_cast %79 : vector<2xf32> to vector<2x1xf32>
    %c0_45 = arith.constant 0 : index
    %c0_46 = arith.constant 0 : index
    %81 = vector.load %arg16[%c0_45, %c0_46] : memref<1x1xf32, #tpu.memory_space<vmem>>, vector<1x1xf32>
    %82 = vector.broadcast %81 : vector<1x1xf32> to vector<2x1xf32>
    %83 = arith.addf %80, %82 : vector<2x1xf32>
    %c0_47 = arith.constant 0 : index
    %c0_48 = arith.constant 0 : index
    %84 = vector.load %arg17[%c0_47, %c0_48] : memref<2x1xf32, #tpu.memory_space<vmem>>, vector<2x1xf32>
    tpu.vector_store %arg17[%c0_47, %c0_48], %83 {strides = array<i32>} : memref<2x1xf32, #tpu.memory_space<vmem>>, vector<2x1xf32>,
    return
  }
  func.func @transform_0(%arg0: i32) -> (i32, i32) {
    %c0_i32 = arith.constant 0 : i32
    %c0_i32_0 = arith.constant 0 : i32
    %c0_i32_1 = arith.constant 0 : i32
    return %c0_i32, %c0_i32_0 : i32, i32
  }
  func.func @transform_1(%arg0: i32) -> (i32, i32) {
    %c0_i32 = arith.constant 0 : i32
    %c0_i32_0 = arith.constant 0 : i32
    %c0_i32_1 = arith.constant 0 : i32
    return %c0_i32, %c0_i32_0 : i32, i32
  }
  func.func @transform_2(%arg0: i32) -> (i32, i32) {
    %c0_i32 = arith.constant 0 : i32
    %c0_i32_0 = arith.constant 0 : i32
    %c0_i32_1 = arith.constant 0 : i32
    return %c0_i32, %c0_i32_0 : i32, i32
  }
  func.func @transform_3(%arg0: i32) -> (i32, i32) {
    %c0_i32 = arith.constant 0 : i32
    %c0_i32_0 = arith.constant 0 : i32
    %c0_i32_1 = arith.constant 0 : i32
    return %c0_i32, %c0_i32_0 : i32, i32
  }
  func.func @transform_4(%arg0: i32) -> (i32, i32) {
    %c0_i32 = arith.constant 0 : i32
    %c0_i32_0 = arith.constant 0 : i32
    %c0_i32_1 = arith.constant 0 : i32
    return %c0_i32, %c0_i32_0 : i32, i32
  }
  func.func @transform_5(%arg0: i32) -> (i32, i32) {
    %c0_i32 = arith.constant 0 : i32
    %c0_i32_0 = arith.constant 0 : i32
    %c0_i32_1 = arith.constant 0 : i32
    return %c0_i32, %c0_i32_0 : i32, i32
  }
  func.func @transform_6(%arg0: i32) -> (i32, i32) {
    %c0_i32 = arith.constant 0 : i32
    %c0_i32_0 = arith.constant 0 : i32
    %c0_i32_1 = arith.constant 0 : i32
    return %c0_i32, %c0_i32_0 : i32, i32
  }
  func.func @transform_7(%arg0: i32) -> (i32, i32) {
    %c0_i32 = arith.constant 0 : i32
    %c0_i32_0 = arith.constant 0 : i32
    %c0_i32_1 = arith.constant 0 : i32
    return %c0_i32, %c0_i32_0 : i32, i32
  }
  func.func @transform_8(%arg0: i32) -> (i32, i32) {
    %c0_i32 = arith.constant 0 : i32
    %c0_i32_0 = arith.constant 0 : i32
    %c0_i32_1 = arith.constant 0 : i32
    return %c0_i32, %c0_i32_0 : i32, i32
  }
  func.func @transform_9(%arg0: i32) -> (i32, i32) {
    %c0_i32 = arith.constant 0 : i32
    %c0_i32_0 = arith.constant 0 : i32
    %c0_i32_1 = arith.constant 0 : i32
    return %c0_i32, %c0_i32_0 : i32, i32
  }
  func.func @transform_10(%arg0: i32) -> (i32, i32) {
    %c0_i32 = arith.constant 0 : i32
    %c0_i32_0 = arith.constant 0 : i32
    %c0_i32_1 = arith.constant 0 : i32
    return %c0_i32, %c0_i32_0 : i32, i32
  }
  func.func @transform_11(%arg0: i32) -> (i32, i32) {
    %c0_i32 = arith.constant 0 : i32
    %c0_i32_0 = arith.constant 0 : i32
    %c0_i32_1 = arith.constant 0 : i32
    return %c0_i32, %c0_i32_0 : i32, i32
  }
  func.func @transform_12(%arg0: i32) -> (i32, i32) {
    %c0_i32 = arith.constant 0 : i32
    %c0_i32_0 = arith.constant 0 : i32
    %c0_i32_1 = arith.constant 0 : i32
    return %c0_i32, %c0_i32_0 : i32, i32
  }
  func.func @transform_13(%arg0: i32) -> (i32, i32) {
    %c0_i32 = arith.constant 0 : i32
    %c0_i32_0 = arith.constant 0 : i32
    %c0_i32_1 = arith.constant 0 : i32
    return %c0_i32, %c0_i32_0 : i32, i32
  }
  func.func @transform_14(%arg0: i32) -> (i32, i32) {
    %c0_i32 = arith.constant 0 : i32
    %c0_i32_0 = arith.constant 0 : i32
    %c0_i32_1 = arith.constant 0 : i32
    return %c0_i32, %c0_i32_0 : i32, i32
  }
  func.func @transform_15(%arg0: i32) -> (i32, i32) {
    %c0_i32 = arith.constant 0 : i32
    %c0_i32_0 = arith.constant 0 : i32
    %c0_i32_1 = arith.constant 0 : i32
    return %c0_i32, %c0_i32_0 : i32, i32
  }
  func.func @transform_16(%arg0: i32) -> (i32, i32) {
    %c0_i32 = arith.constant 0 : i32
    %c0_i32_0 = arith.constant 0 : i32
    %c0_i32_1 = arith.constant 0 : i32
    return %c0_i32, %c0_i32_0 : i32, i32
  }
}

</mosaic_0001>

<bundles_post_ra>
// kernel: tpu_custom_call.1
= control target key start
LH: loop header
LB: loop body
LE: loop exit
PB: predicated region body
PF: predicated region fallthrough
CT: control target
= control target key end

     0   :  { %vm71_vm0 = vcmask 261120   ;;  %vm183_vm1 = vcmask 1043456   ;;  %vm158_vm2 = vcmask 31744   ;;  %s1666_s2 = inlined_call_operand.vmem [shape: f32[32,4], index: 2, kind: input, shape index: {}]   ;;  %s1667_s0 = inlined_call_operand.vmem [shape: f32[64,32], index: 0, kind: input, shape index: {}]   ;;  %s1668_s3 = inlined_call_operand.vmem [shape: f32[1,4], index: 3, kind: input, shape index: {}]   ;;  %s1669_s4 = inlined_call_operand.vmem [shape: f32[4,4], index: 4, kind: input, shape index: {}]   ;;  %s1670_s6 = inlined_call_operand.vmem [shape: f32[4,4], index: 6, kind: input, shape index: {}]   ;;  %s1671_s1 = inlined_call_operand.vmem [shape: f32[64,4], index: 1, kind: input, shape index: {}]   ;;  %s1672_s5 = inlined_call_operand.vmem [shape: f32[1,4], index: 5, kind: input, shape index: {}]   ;;  %s1673_s7 = inlined_call_operand.vmem [shape: f32[1,4], index: 7, kind: input, shape index: {}]   ;;  %s1674_s8 = inlined_call_operand.vmem [shape: f32[4,4], index: 8, kind: input, shape index: {}]   ;;  %s1675_s9 = inlined_call_operand.vmem [shape: f32[1,4], index: 9, kind: input, shape index: {}]   ;;  %s1676_s11 = inlined_call_operand.vmem [shape: f32[1,4], index: 11, kind: input, shape index: {}]   ;;  %s1677_s10 = inlined_call_operand.vmem [shape: f32[4,4], index: 10, kind: input, shape index: {}]   ;;  %s1678_s12 = inlined_call_operand.vmem [shape: f32[1,4], index: 12, kind: input, shape index: {}]   ;;  %s1679_s13 = inlined_call_operand.vmem [shape: f32[1,4], index: 13, kind: input, shape index: {}]   ;;  %s1680_s14 = inlined_call_operand.vmem [shape: f32[32,4], index: 14, kind: input, shape index: {}]   ;;  %s1681_s15 = inlined_call_operand.<no memory space> [shape: f32[1,1], index: 15, kind: input, shape index: {}]   ;;  %s1682_s16 = inlined_call_operand.vmem [shape: f32[2,1], index: 16, kind: output, shape index: {}]  }
   0x1   :  { %1684 = sst [smem:[#allocation3_spill]] %s1666_s2  ;;  %v55_v4 = vld [vmem:[%s1667_s0] sm:$0xff]  ;;  %v56_v5 = vld [vmem:[%s1667_s0 + $0x8] sm:$0xff]  ;;  %v57_v6 = vld [vmem:[%s1667_s0 + $0x10] sm:$0xff] }
   0x2   :  { %s1685_s23 = sld [smem:[#allocation3_spill]]  ;;  %v58_v7 = vld [vmem:[%s1667_s0 + $0x18] sm:$0xff]  ;;  %v59_v8 = vld [vmem:[%s1667_s0 + $0x20] sm:$0xff]  ;;  %v60_v9 = vld [vmem:[%s1667_s0 + $0x28] sm:$0xff] }
   0x3   :  { %v61_v10 = vld [vmem:[%s1667_s0 + $0x30] sm:$0xff]  ;;  %v62_v11 = vld [vmem:[%s1667_s0 + $0x38] sm:$0xff]  ;;  %v153_v12 = vld [vmem:[%s1669_s4] sm:$0xf] }
   0x4   :  { %v228_v13 = vld [vmem:[%s1670_s6] sm:$0xf]  ;;  %1094 = vmatpush.msk.msra.mxu1 %vm183_vm1, %v153_v12  ;;  %1154 = vmatpush.msk.msra.mxu3 %vm183_vm1, %v153_v12  ;;  %v138_v20 = vld [vmem:[%s1671_s1 + $0x8] sm:$0xff]  ;;  %v139_v24 = vld [vmem:[%s1671_s1 + $0x10] sm:$0xff] }
   0x5   :  { %1103 = vmatpush.msk.msra.mxu2 %vm183_vm1, %v228_v13  ;;  %v1160_v14 = vld [vmem:[%s1668_s3] ss:$0 sm:$0xff]  ;;  %v140_v28 = vld [vmem:[%s1671_s1 + $0x18] sm:$0xff]  ;;  %v142_v37 = vld [vmem:[%s1671_s1 + $0x28] sm:$0xff] }
   0x6   :  { %v137_v16 = vld [vmem:[%s1671_s1] sm:$0xff]  ;;  %v143_v41 = vld [vmem:[%s1671_s1 + $0x30] sm:$0xff]  ;;  %v144_v45 = vld [vmem:[%s1671_s1 + $0x38] sm:$0xff] }
   0x7   :  { %v277_v31 = vld [vmem:[%s1674_s8] sm:$0xf] }
   0x8   :  { %v66_v0 = vld [vmem:[%s1685_s23 + $0x18] sm:$0xff]  ;;  %v65_v1 = vld [vmem:[%s1685_s23 + $0x10] sm:$0xff]  ;;  %v64_v2 = vld [vmem:[%s1685_s23 + $0x8] sm:$0xff]  ;;  %1112 = vmatpush.msk.msrb.mxu3 %vm183_vm1, %v277_v31 }
   0x9   :  { %108 = vmatpush.msra.mxu0 %v66_v0  ;;  %v63_v3 = vld [vmem:[%s1685_s23] sm:$0xff] }
   0xa   :  { %v141_v33 = vld [vmem:[%s1671_s1 + $0x20] sm:$0xff] }
   0xb   :  { %109 = vmatpush.msra.mxu0 %v65_v1  ;;  %v1162_v52 = vld [vmem:[%s1673_s7] ss:$0 sm:$0xff] }
   0xc   :  { %v1161_v60 = vld [vmem:[%s1672_s5] ss:$0 sm:$0xff] }
   0xd   :  { %110 = vmatpush.msra.mxu0 %v64_v2 }
   0xf   :  { %111 = vmatpush.msra.mxu0 %v63_v3 }
  0x10   :  { %1086 = vmatmul.msk.f32.vlgmr.msra.gmra.mxu0 %vm71_vm0, %v55_v4 }
  0x18   :  { %1087 = vmatmul.msk.f32.gmra.mxu0 %vm71_vm0, %v56_v5 }
  0x20   :  { %1088 = vmatmul.msk.f32.gmra.mxu0 %vm71_vm0, %v57_v6 }
  0x28   :  { %1089 = vmatmul.msk.f32.gmra.mxu0 %vm71_vm0, %v58_v7 }
  0x30   :  { %1090 = vmatmul.msk.f32.gmra.mxu0 %vm71_vm0, %v59_v8 }
  0x38   :  { %1091 = vmatmul.msk.f32.gmra.mxu0 %vm71_vm0, %v60_v9 }
  0x40   :  { %1092 = vmatmul.msk.f32.gmra.mxu0 %vm71_vm0, %v61_v10 }
  0x48   :  { %1093 = vmatmul.msk.f32.gmra.mxu0 %vm71_vm0, %v62_v11 }
  0x8d   :  { %v113_v15 = vpop.f32.mrf.mxu0 }
  0x8e   :  { %v114_v17 = vadd.f32 %v1160_v14, %v113_v15 }
  0x90   :  { %v1363_v18 = vadd.f32 %v137_v16, %v114_v17 }
  0x92   :  { %1095 = vmatmul.msk.f32.vlgmr.msra.gmra.mxu1 %vm158_vm2, %v1363_v18  ;;  %1104 = vmatmul.msk.f32.vlgmr.msra.gmra.mxu2 %vm158_vm2, %v1363_v18 }
  0x95   :  { %v116_v19 = vpop.f32.mrf.mxu0 }
  0x96   :  { %v117_v21 = vadd.f32 %v1160_v14, %v116_v19 }
  0x98   :  { %v1372_v22 = vadd.f32 %v138_v20, %v117_v21  ;;  %v1163_v20 = vld [vmem:[%s1675_s9] ss:$0 sm:$0xff] }
  0x9a   :  { %1096 = vmatmul.msk.f32.gmra.mxu1 %vm158_vm2, %v1372_v22  ;;  %1105 = vmatmul.msk.f32.gmra.mxu2 %vm158_vm2, %v1372_v22 }
  0x9d   :  { %v119_v23 = vpop.f32.mrf.mxu0 }
  0x9e   :  { %v120_v25 = vadd.f32 %v1160_v14, %v119_v23 }
  0xa0   :  { %v1381_v26 = vadd.f32 %v139_v24, %v120_v25 }
  0xa2   :  { %1097 = vmatmul.msk.f32.gmra.mxu1 %vm158_vm2, %v1381_v26  ;;  %1106 = vmatmul.msk.f32.gmra.mxu2 %vm158_vm2, %v1381_v26 }
  0xa5   :  { %v122_v27 = vpop.f32.mrf.mxu0 }
  0xa6   :  { %v123_v29 = vadd.f32 %v1160_v14, %v122_v27 }
  0xa8   :  { %v1390_v30 = vadd.f32 %v140_v28, %v123_v29 }
  0xaa   :  { %1098 = vmatmul.msk.f32.gmra.mxu1 %vm158_vm2, %v1390_v30  ;;  %1107 = vmatmul.msk.f32.gmra.mxu2 %vm158_vm2, %v1390_v30 }
  0xad   :  { %v125_v32 = vpop.f32.mrf.mxu0 }
  0xae   :  { %v126_v34 = vadd.f32 %v1160_v14, %v125_v32 }
  0xb0   :  { %v1403_v35 = vadd.f32 %v141_v33, %v126_v34 }
  0xb2   :  { %1108 = vmatmul.msk.f32.gmra.mxu2 %vm158_vm2, %v1403_v35  ;;  %1099 = vmatmul.msk.f32.gmra.mxu1 %vm158_vm2, %v1403_v35 }
  0xb5   :  { %v128_v36 = vpop.f32.mrf.mxu0 }
  0xb6   :  { %v129_v38 = vadd.f32 %v1160_v14, %v128_v36 }
  0xb8   :  { %v1412_v39 = vadd.f32 %v142_v37, %v129_v38 }
  0xba   :  { %1109 = vmatmul.msk.f32.gmra.mxu2 %vm158_vm2, %v1412_v39  ;;  %1100 = vmatmul.msk.f32.gmra.mxu1 %vm158_vm2, %v1412_v39 }
  0xbd   :  { %v131_v40 = vpop.f32.mrf.mxu0 }
  0xbe   :  { %v132_v42 = vadd.f32 %v1160_v14, %v131_v40 }
  0xc0   :  { %v1421_v43 = vadd.f32 %v143_v41, %v132_v42 }
  0xc2   :  { %1110 = vmatmul.msk.f32.gmra.mxu2 %vm158_vm2, %v1421_v43  ;;  %1101 = vmatmul.msk.f32.gmra.mxu1 %vm158_vm2, %v1421_v43 }
  0xc5   :  { %v134_v44 = vpop.f32.mrf.mxu0 }
  0xc6   :  { %v135_v46 = vadd.f32 %v1160_v14, %v134_v44 }
  0xc8   :  { %v1430_v47 = vadd.f32 %v144_v45, %v135_v46 }
  0xca   :  { %1102 = vmatmul.msk.f32.vlgmr.msra.gmra.mxu3 %vm158_vm2, %v1430_v47  ;;  %1111 = vmatmul.msk.f32.gmra.mxu2 %vm158_vm2, %v1430_v47 }
  0xd2   :  { %1113 = vmatmul.msk.f32.vlgmr.msrb.gmra.mxu3 %vm158_vm2, %v1363_v18 }
  0xda   :  { %1114 = vmatmul.msk.f32.gmra.mxu3 %vm158_vm2, %v1372_v22 }
  0xe2   :  { %1115 = vmatmul.msk.f32.gmra.mxu3 %vm158_vm2, %v1381_v26 }
  0xea   :  { %1116 = vmatmul.msk.f32.gmra.mxu3 %vm158_vm2, %v1390_v30 }
  0xf2   :  { %1117 = vmatmul.msk.f32.gmra.mxu3 %vm158_vm2, %v1403_v35 }
  0xfa   :  { %1118 = vmatmul.msk.f32.gmra.mxu3 %vm158_vm2, %v1412_v39 }
 0x102   :  { %1119 = vmatmul.msk.f32.gmra.mxu3 %vm158_vm2, %v1421_v43 }
 0x10a   :  { %1120 = vmatmul.msk.f32.gmra.mxu3 %vm158_vm2, %v1430_v47 }
 0x10f   :  { %v204_v50 = vpop.f32.mrf.mxu1 }
 0x110   :  { %v205_v62 = vadd.f32 %v1161_v60, %v204_v50 }
 0x115   :  { %v253_v48 = vpop.f32.mrf.mxu2 }
 0x116   :  { %v254_v61 = vadd.f32 %v1162_v52, %v253_v48 }
 0x117   :  { %v207_v54 = vpop.f32.mrf.mxu1 }
 0x118   :  { %v208_v2 = vadd.f32 %v1161_v60, %v207_v54 }
 0x11d   :  { %v256_v49 = vpop.f32.mrf.mxu2 }
 0x11e   :  { %v257_v58 = vadd.f32 %v1162_v52, %v256_v49 }
 0x11f   :  { %v210_v59 = vpop.f32.mrf.mxu1 }
 0x120   :  { %v211_v63 = vadd.f32 %v1161_v60, %v210_v59 }
 0x125   :  { %v259_v51 = vpop.f32.mrf.mxu2 }
 0x126   :  { %v260_v56 = vadd.f32 %v1162_v52, %v259_v51 }
 0x127   :  { %v213_v1 = vpop.f32.mrf.mxu1 }
 0x128   :  { %v214_v3 = vadd.f32 %v1161_v60, %v213_v1 }
 0x12d   :  { %v262_v53 = vpop.f32.mrf.mxu2 }
 0x12e   :  { %v263_v55 = vadd.f32 %v1162_v52, %v262_v53 }
 0x12f   :  { %v216_v11 = vpop.f32.mrf.mxu1 }
 0x130   :  { %1121 = vmatpush.xpose.msk.msrb.mxu0 %vm158_vm2, %v263_v55  ;;  %1155 = vmatpush.xpose.msk.msrb.mxu2 %vm158_vm2, %v263_v55  ;;  %v217_v13 = vadd.f32 %v1161_v60, %v216_v11 }
 0x134   :  { %1122 = vmatpush.xpose.msk.msrb.mxu0 %vm158_vm2, %v260_v56  ;;  %1156 = vmatpush.xpose.msk.msrb.mxu2 %vm158_vm2, %v260_v56 }
 0x135   :  { %v265_v57 = vpop.f32.mrf.mxu2 }
 0x136   :  { %v266_v12 = vadd.f32 %v1162_v52, %v265_v57 }
 0x137   :  { %v219_v15 = vpop.f32.mrf.mxu1 }
 0x138   :  { %1123 = vmatpush.xpose.msk.msrb.mxu0 %vm158_vm2, %v257_v58  ;;  %1157 = vmatpush.xpose.msk.msrb.mxu2 %vm158_vm2, %v257_v58  ;;  %v220_v16 = vadd.f32 %v1161_v60, %v219_v15 }
 0x13c   :  { %1124 = vmatpush.xpose.msk.msrb.mxu0 %vm158_vm2, %v254_v61  ;;  %1158 = vmatpush.xpose.msk.msrb.mxu2 %vm158_vm2, %v254_v61 }
 0x13d   :  { %v268_v0 = vpop.f32.mrf.mxu2 }
 0x13e   :  { %v269_v10 = vadd.f32 %v1162_v52, %v268_v0 }
 0x13f   :  { %1125 = vmatmul.msk.f32.vlgmr.msrb.gmra.mxu0 %vm158_vm2, %v205_v62  ;;  %1127 = vmatmul.msk.f32.vlgmr.msrb.gmra.mxu2 %vm158_vm2, %v211_v63  ;;  %v222_v19 = vpop.f32.mrf.mxu1 }
 0x140   :  { %v223_v21 = vadd.f32 %v1161_v60, %v222_v19 }
 0x145   :  { %v271_v4 = vpop.f32.mrf.mxu2 }
 0x146   :  { %v272_v8 = vadd.f32 %v1162_v52, %v271_v4 }
 0x147   :  { %1126 = vmatmul.msk.f32.gmra.mxu0 %vm158_vm2, %v208_v2  ;;  %1128 = vmatmul.msk.f32.gmra.mxu2 %vm158_vm2, %v214_v3 }
 0x14d   :  { %v225_v5 = vpop.f32.mrf.mxu3  ;;  %v274_v6 = vpop.f32.mrf.mxu2 }
 0x14e   :  { %v275_v7 = vadd.f32 %v1162_v52, %v274_v6  ;;  %v226_v29 = vadd.f32 %v1161_v60, %v225_v5 }
 0x150   :  { %1129 = vmatpush.xpose.msk.msra.mxu2 %vm158_vm2, %v275_v7 }
 0x154   :  { %1130 = vmatpush.xpose.msk.msra.mxu2 %vm158_vm2, %v272_v8 }
 0x155   :  { %v302_v9 = vpop.f32.mrf.mxu3 }
 0x156   :  { %v303_v28 = vadd.f32 %v1163_v20, %v302_v9 }
 0x158   :  { %1131 = vmatpush.xpose.msk.msra.mxu2 %vm158_vm2, %v269_v10 }
 0x15c   :  { %1132 = vmatpush.xpose.msk.msra.mxu2 %vm158_vm2, %v266_v12 }
 0x15d   :  { %v305_v14 = vpop.f32.mrf.mxu3 }
 0x15e   :  { %v306_v27 = vadd.f32 %v1163_v20, %v305_v14 }
 0x15f   :  { %1133 = vmatmul.msk.f32.vlgmr.msra.gmra.mxu2 %vm158_vm2, %v217_v13 }
 0x165   :  { %v308_v17 = vpop.f32.mrf.mxu3 }
 0x166   :  { %v309_v25 = vadd.f32 %v1163_v20, %v308_v17 }
 0x167   :  { %1134 = vmatmul.msk.f32.gmra.mxu2 %vm158_vm2, %v220_v16 }
 0x16d   :  { %v311_v23 = vpop.f32.mrf.mxu3 }
 0x16e   :  { %v312_v24 = vadd.f32 %v1163_v20, %v311_v23 }
 0x16f   :  { %1135 = vmatmul.msk.f32.gmra.mxu2 %vm158_vm2, %v223_v21 }
 0x170   :  { %536 = vmatpush.msra.mxu3 %v312_v24 }
 0x172   :  { %537 = vmatpush.msra.mxu3 %v309_v25 }
 0x174   :  { %538 = vmatpush.msra.mxu3 %v306_v27 }
 0x175   :  { %v314_v31 = vpop.f32.mrf.mxu3 }
 0x176   :  { %539 = vmatpush.msra.mxu3 %v303_v28  ;;  %v315_v40 = vadd.f32 %v1163_v20, %v314_v31 }
 0x177   :  { %1136 = vmatmul.msk.f32.gmra.mxu2 %vm158_vm2, %v226_v29 }
 0x17d   :  { %v317_v32 = vpop.f32.mrf.mxu3 }
 0x17e   :  { %v318_v38 = vadd.f32 %v1163_v20, %v317_v32 }
 0x185   :  { %v320_v33 = vpop.f32.mrf.mxu3 }
 0x186   :  { %v321_v37 = vadd.f32 %v1163_v20, %v320_v33 }
 0x18d   :  { %v323_v34 = vpop.f32.mrf.mxu3 }
 0x18e   :  { %v324_v36 = vadd.f32 %v1163_v20, %v323_v34 }
 0x190   :  { %577 = vmatpush.msra.mxu0 %v324_v36 }
 0x192   :  { %578 = vmatpush.msra.mxu0 %v321_v37 }
 0x194   :  { %579 = vmatpush.msra.mxu0 %v318_v38 }
 0x196   :  { %580 = vmatpush.msra.mxu0 %v315_v40 }
 0x1bc   :  { %v367_v41 = vpop.f32.mrf.mxu0 }
 0x1bd   :  { %v432_v42 = vmul.f32 0.5, %v367_v41 }
 0x1bf   :  { %v440_v44 = vsel %vm71_vm0, %v432_v42, -inf }
 0x1c0   :  { %441 = vmax.xlane.f32.xlu0 %v440_v44 }
 0x1c2   :  { %v373_v45 = vpop.f32.mrf.mxu2 }
 0x1c3   :  { %v434_v46 = vmul.f32 0.5, %v373_v45 }
 0x1c4   :  { %v370_v48 = vpop.f32.mrf.mxu0 }
 0x1c5   :  { %v433_v49 = vmul.f32 0.5, %v370_v48  ;;  %v446_v50 = vsel %vm71_vm0, %v434_v46, -inf }
 0x1c6   :  { %447 = vmax.xlane.f32.xlu1 %v446_v50 }
 0x1c7   :  { %v443_v51 = vsel %vm71_vm0, %v433_v49, -inf }
 0x1c8   :  { %444 = vmax.xlane.f32.xlu0 %v443_v51  ;;  %v714_v51 = vld [vmem:[%s1677_s10] sm:$0xf] }
 0x1c9   :  { %1145 = vmatpush.msk.msrb.mxu1 %vm183_vm1, %v714_v51 }
 0x1ca   :  { %v376_v52 = vpop.f32.mrf.mxu2 }
 0x1cb   :  { %v435_v53 = vmul.f32 0.5, %v376_v52 }
 0x1cd   :  { %v449_v54 = vsel %vm71_vm0, %v435_v53, -inf }
 0x1ce   :  { %450 = vmax.xlane.f32.xlu1 %v449_v54 }
 0x1e2   :  { %v420_v55 = vpop.f32.mrf.mxu2 }
 0x1e3   :  { %v436_v56 = vmul.f32 0.5, %v420_v55 }
 0x1e5   :  { %v452_v57 = vsel %vm71_vm0, %v436_v56, -inf }
 0x1e6   :  { %453 = vmax.xlane.f32.xlu2 %v452_v57 }
 0x1ea   :  { %v423_v58 = vpop.f32.mrf.mxu2 }
 0x1eb   :  { %v437_v59 = vmul.f32 0.5, %v423_v58 }
 0x1ed   :  { %v455_v60 = vsel %vm71_vm0, %v437_v59, -inf }
 0x1ee   :  { %456 = vmax.xlane.f32.xlu2 %v455_v60 }
 0x1f2   :  { %v426_v61 = vpop.f32.mrf.mxu2 }
 0x1f3   :  { %v438_v62 = vmul.f32 0.5, %v426_v61 }
 0x1f5   :  { %v458_v63 = vsel %vm71_vm0, %v438_v62, -inf }
 0x1f6   :  { %459 = vmax.xlane.f32.xlu0 %v458_v63 }
 0x1fa   :  { %v429_v0 = vpop.f32.mrf.mxu2 }
 0x1fb   :  { %v439_v1 = vmul.f32 0.5, %v429_v0 }
 0x1fd   :  { %v461_v2 = vsel %vm71_vm0, %v439_v1, -inf }
 0x1fe   :  { %462 = vmax.xlane.f32.xlu1 %v461_v2 }
 0x233   :  { %v442_v3 = vpop.xlane.xlu0 %441 }
 0x234   :  { %v464_v4 = vsub.f32 %v432_v42, %v442_v3 }
 0x236   :  { %v472_v5 = vmul.f32 1.442695, %v464_v4 }
 0x238   :  { %1168 = vpow2.f32 %v472_v5 }
 0x239   :  { %v448_v6 = vpop.xlane.xlu1 %447 }
 0x23a   :  { %v466_v7 = vsub.f32 %v434_v46, %v448_v6 }
 0x23b   :  { %v445_v8 = vpop.xlane.xlu0 %444 }
 0x23c   :  { %v476_v9 = vmul.f32 1.442695, %v466_v7  ;;  %v465_v10 = vsub.f32 %v433_v49, %v445_v8 }
 0x23e   :  { %v1169_v11 = vpop.eup %1168  ;;  %1170 = vpow2.f32 %v476_v9  ;;  %v474_v12 = vmul.f32 1.442695, %v465_v10 }
 0x23f   :  { %1137 = vmatmul.msk.f32.vlgmr.msra.gmra.mxu3 %vm71_vm0, %v1169_v11  ;;  %v488_v13 = vsel %vm71_vm0, %v1169_v11, 0.0 }
 0x240   :  { %1172 = vpow2.f32 %v474_v12  ;;  %489 = vadd.xlane.f32.xlu2 %v488_v13 }
 0x241   :  { %v451_v14 = vpop.xlane.xlu1 %450 }
 0x242   :  { %v467_v15 = vsub.f32 %v435_v53, %v451_v14 }
 0x244   :  { %v1171_v16 = vpop.eup %1170  ;;  %v478_v17 = vmul.f32 1.442695, %v467_v15 }
 0x245   :  { %v494_v19 = vsel %vm71_vm0, %v1171_v16, 0.0 }
 0x246   :  { %v1173_v20 = vpop.eup %1172  ;;  %1174 = vpow2.f32 %v478_v17  ;;  %495 = vadd.xlane.f32.xlu1 %v494_v19 }
 0x247   :  { %1138 = vmatmul.msk.f32.gmra.mxu3 %vm71_vm0, %v1173_v20  ;;  %v491_v21 = vsel %vm71_vm0, %v1173_v20, 0.0 }
 0x248   :  { %492 = vadd.xlane.f32.xlu0 %v491_v21 }
 0x24c   :  { %v1175_v23 = vpop.eup %1174 }
 0x24d   :  { %v497_v24 = vsel %vm71_vm0, %v1175_v23, 0.0 }
 0x24e   :  { %498 = vadd.xlane.f32.xlu2 %v497_v24 }
 0x24f   :  { %1139 = vmatmul.msk.f32.gmra.mxu3 %vm71_vm0, %v1171_v16 }
 0x257   :  { %1140 = vmatmul.msk.f32.gmra.mxu3 %vm71_vm0, %v1175_v23 }
 0x259   :  { %v454_v25 = vpop.xlane.xlu2 %453 }
 0x25a   :  { %v468_v27 = vsub.f32 %v436_v56, %v454_v25 }
 0x25c   :  { %v480_v28 = vmul.f32 1.442695, %v468_v27 }
 0x25e   :  { %1176 = vpow2.f32 %v480_v28 }
 0x261   :  { %v457_v29 = vpop.xlane.xlu2 %456 }
 0x262   :  { %v469_v31 = vsub.f32 %v437_v59, %v457_v29 }
 0x264   :  { %v1177_v32 = vpop.eup %1176  ;;  %v482_v33 = vmul.f32 1.442695, %v469_v31 }
 0x265   :  { %1141 = vmatmul.msk.f32.vlgmr.msra.gmra.mxu0 %vm71_vm0, %v1177_v32  ;;  %v500_v34 = vsel %vm71_vm0, %v1177_v32, 0.0 }
 0x266   :  { %1178 = vpow2.f32 %v482_v33  ;;  %501 = vadd.xlane.f32.xlu0 %v500_v34 }
 0x269   :  { %v460_v36 = vpop.xlane.xlu0 %459 }
 0x26a   :  { %v470_v37 = vsub.f32 %v438_v62, %v460_v36 }
 0x26c   :  { %v1179_v38 = vpop.eup %1178  ;;  %v484_v40 = vmul.f32 1.442695, %v470_v37 }
 0x26d   :  { %1142 = vmatmul.msk.f32.gmra.mxu0 %vm71_vm0, %v1179_v38  ;;  %v503_v41 = vsel %vm71_vm0, %v1179_v38, 0.0 }
 0x26e   :  { %1180 = vpow2.f32 %v484_v40  ;;  %504 = vadd.xlane.f32.xlu1 %v503_v41 }
 0x271   :  { %v463_v42 = vpop.xlane.xlu1 %462 }
 0x272   :  { %v471_v44 = vsub.f32 %v439_v1, %v463_v42 }
 0x274   :  { %v1181_v45 = vpop.eup %1180  ;;  %v486_v46 = vmul.f32 1.442695, %v471_v44 }
 0x275   :  { %1143 = vmatmul.msk.f32.gmra.mxu0 %vm71_vm0, %v1181_v45  ;;  %v506_v48 = vsel %vm71_vm0, %v1181_v45, 0.0 }
 0x276   :  { %1182 = vpow2.f32 %v486_v46  ;;  %507 = vadd.xlane.f32.xlu2 %v506_v48 }
 0x27c   :  { %v1183_v49 = vpop.eup %1182 }
 0x27d   :  { %1144 = vmatmul.msk.f32.gmra.mxu0 %vm71_vm0, %v1183_v49  ;;  %v509_v50 = vsel %vm71_vm0, %v1183_v49, 0.0 }
 0x27e   :  { %510 = vadd.xlane.f32.xlu0 %v509_v50 }
 0x2b3   :  { %v490_v52 = vpop.xlane.xlu2 %489 }
 0x2b4   :  { %1184 = vrcp.f32 %v490_v52  ;;  %v605_v58 = vand.u32 2147483648, %v490_v52  ;;  %v603_v60 = vand.u32 2147483647, %v490_v52  ;;  %vm599_vm4 = vweird.f32 %v490_v52 }
 0x2b6   :  { %v606_v3 = vor.u32 1.1754944e-38, %v605_v58  ;;  %vm604_vm6 = vcmp.eq.f32.partialorder %v603_v60, 8.507059e+37 }
 0x2b9   :  { %v496_v53 = vpop.xlane.xlu1 %495 }
 0x2ba   :  { %v1185_v54 = vpop.eup %1184  ;;  %1186 = vrcp.f32 %v496_v53  ;;  %v633_v27 = vand.u32 2147483648, %v496_v53  ;;  %vm627_vm12 = vweird.f32 %v496_v53  ;;  %v631_v28 = vand.u32 2147483647, %v496_v53 }
 0x2bb   :  { %v595_v55 = vmul.f32 %v1185_v54, %v490_v52  ;;  %v493_v56 = vpop.xlane.xlu0 %492  ;;  %vm600_vm3 = vweird.f32 %v1185_v54 }
 0x2bc   :  { %1188 = vrcp.f32 %v493_v56  ;;  %vm601_vm5 = vmor %vm599_vm4, %vm600_vm3  ;;  %v619_v10 = vand.u32 2147483648, %v493_v56  ;;  %v617_v12 = vand.u32 2147483647, %v493_v56  ;;  %vm613_vm8 = vweird.f32 %v493_v56 }
 0x2bd   :  { %v596_v57 = vsub.f32 1.0, %v595_v55  ;;  %v634_v33 = vor.u32 1.1754944e-38, %v633_v27  ;;  %vm632_vm14 = vcmp.eq.f32.partialorder %v631_v28, 8.507059e+37 }
 0x2be   :  { %v620_v19 = vor.u32 1.1754944e-38, %v619_v10  ;;  %vm618_vm10 = vcmp.eq.f32.partialorder %v617_v12, 8.507059e+37 }
 0x2bf   :  { %v597_v59 = vmul.f32 %v1185_v54, %v596_v57 }
 0x2c0   :  { %v1187_v61 = vpop.eup %1186 }
 0x2c1   :  { %v623_v62 = vmul.f32 %v1187_v61, %v496_v53  ;;  %v499_v63 = vpop.xlane.xlu2 %498  ;;  %v598_v0 = vadd.f32 %v1185_v54, %v597_v59  ;;  %vm628_vm11 = vweird.f32 %v1187_v61 }
 0x2c2   :  { %v1189_v1 = vpop.eup %1188  ;;  %1190 = vrcp.f32 %v499_v63  ;;  %v541_v2 = vpop.f32.mrf.mxu3  ;;  %vm629_vm13 = vmor %vm627_vm12, %vm628_vm11  ;;  %v647_v38 = vand.u32 2147483648, %v499_v63  ;;  %vm641_vm0 = vweird.f32 %v499_v63  ;;  %v645_v40 = vand.u32 2147483647, %v499_v63 }
 0x2c3   :  { %v609_v4 = vmul.f32 %v1189_v1, %v493_v56  ;;  %v602_v5 = vsel %vm601_vm5, %v1185_v54, %v598_v0  ;;  %v624_v7 = vsub.f32 1.0, %v623_v62  ;;  %vm614_vm7 = vweird.f32 %v1189_v1 }
 0x2c4   :  { %v607_v6 = vsel %vm604_vm6, %v606_v3, %v602_v5  ;;  %vm615_vm9 = vmor %vm613_vm8, %vm614_vm7  ;;  %v648_v45 = vor.u32 1.1754944e-38, %v647_v38  ;;  %vm646_vm3 = vcmp.eq.f32.partialorder %v645_v40, 8.507059e+37 }
 0x2c5   :  { %v610_v8 = vsub.f32 1.0, %v609_v4  ;;  %v706_v9 = vmul.f32 %v607_v6, %v541_v2  ;;  %v625_v16 = vmul.f32 %v1187_v61, %v624_v7 }
 0x2c7   :  { %1146 = vmatmul.msk.f32.vlgmr.msrb.gmra.mxu1 %vm158_vm2, %v706_v9  ;;  %v611_v11 = vmul.f32 %v1189_v1, %v610_v8  ;;  %v626_v25 = vadd.f32 %v1187_v61, %v625_v16 }
 0x2c8   :  { %v1191_v13 = vpop.eup %1190 }
 0x2c9   :  { %v637_v14 = vmul.f32 %v1191_v13, %v499_v63  ;;  %v612_v15 = vadd.f32 %v1189_v1, %v611_v11  ;;  %v630_v29 = vsel %vm629_vm13, %v1187_v61, %v626_v25  ;;  %vm642_vm15 = vweird.f32 %v1191_v13 }
 0x2ca   :  { %v544_v17 = vpop.f32.mrf.mxu3  ;;  %v635_v34 = vsel %vm632_vm14, %v634_v33, %v630_v29  ;;  %vm643_vm1 = vmor %vm641_vm0, %vm642_vm15 }
 0x2cb   :  { %v616_v20 = vsel %vm615_vm9, %v1189_v1, %v612_v15  ;;  %v638_v23 = vsub.f32 1.0, %v637_v14 }
 0x2cc   :  { %v621_v21 = vsel %vm618_vm10, %v620_v19, %v616_v20 }
 0x2cd   :  { %v707_v24 = vmul.f32 %v621_v21, %v544_v17  ;;  %v639_v31 = vmul.f32 %v1191_v13, %v638_v23 }
 0x2cf   :  { %1147 = vmatmul.msk.f32.gmra.mxu1 %vm158_vm2, %v707_v24  ;;  %v640_v37 = vadd.f32 %v1191_v13, %v639_v31 }
 0x2d1   :  { %v644_v42 = vsel %vm643_vm1, %v1191_v13, %v640_v37 }
 0x2d2   :  { %v547_v32 = vpop.f32.mrf.mxu3  ;;  %v649_v46 = vsel %vm646_vm3, %v648_v45, %v644_v42  ;;  %v1164_v42 = vld [vmem:[%s1676_s11] ss:$0 sm:$0xff] }
 0x2d3   :  { %v708_v36 = vmul.f32 %v635_v34, %v547_v32 }
 0x2d7   :  { %1148 = vmatmul.msk.f32.gmra.mxu1 %vm158_vm2, %v708_v36 }
 0x2d9   :  { %v502_v41 = vpop.xlane.xlu0 %501 }
 0x2da   :  { %1192 = vrcp.f32 %v502_v41  ;;  %v550_v44 = vpop.f32.mrf.mxu3  ;;  %v661_v54 = vand.u32 2147483648, %v502_v41  ;;  %v659_v56 = vand.u32 2147483647, %v502_v41  ;;  %vm655_vm5 = vweird.f32 %v502_v41 }
 0x2db   :  { %v709_v48 = vmul.f32 %v649_v46, %v550_v44 }
 0x2dc   :  { %v662_v59 = vor.u32 1.1754944e-38, %v661_v54  ;;  %vm660_vm7 = vcmp.eq.f32.partialorder %v659_v56, 8.507059e+37 }
 0x2df   :  { %1149 = vmatmul.msk.f32.gmra.mxu1 %vm158_vm2, %v709_v48 }
 0x2e0   :  { %v1193_v49 = vpop.eup %1192 }
 0x2e1   :  { %v651_v50 = vmul.f32 %v1193_v49, %v502_v41  ;;  %v505_v51 = vpop.xlane.xlu1 %504  ;;  %vm656_vm4 = vweird.f32 %v1193_v49 }
 0x2e2   :  { %1194 = vrcp.f32 %v505_v51  ;;  %v582_v53 = vpop.f32.mrf.mxu0  ;;  %vm657_vm6 = vmor %vm655_vm5, %vm656_vm4  ;;  %v675_v2 = vand.u32 2147483648, %v505_v51  ;;  %v673_v4 = vand.u32 2147483647, %v505_v51  ;;  %vm669_vm9 = vweird.f32 %v505_v51 }
 0x2e3   :  { %v652_v52 = vsub.f32 1.0, %v651_v50 }
 0x2e4   :  { %v676_v8 = vor.u32 1.1754944e-38, %v675_v2  ;;  %vm674_vm11 = vcmp.eq.f32.partialorder %v673_v4, 8.507059e+37 }
 0x2e5   :  { %v653_v55 = vmul.f32 %v1193_v49, %v652_v52 }
 0x2e7   :  { %v654_v57 = vadd.f32 %v1193_v49, %v653_v55 }
 0x2e8   :  { %v1195_v58 = vpop.eup %1194 }
 0x2e9   :  { %v665_v60 = vmul.f32 %v1195_v58, %v505_v51  ;;  %v658_v61 = vsel %vm657_vm6, %v1193_v49, %v654_v57  ;;  %v508_v62 = vpop.xlane.xlu2 %507  ;;  %vm670_vm8 = vweird.f32 %v1195_v58 }
 0x2ea   :  { %v663_v63 = vsel %vm660_vm7, %v662_v59, %v658_v61  ;;  %1196 = vrcp.f32 %v508_v62  ;;  %v585_v5 = vpop.f32.mrf.mxu0  ;;  %vm671_vm10 = vmor %vm669_vm9, %vm670_vm8  ;;  %v689_v15 = vand.u32 2147483648, %v508_v62  ;;  %v687_v17 = vand.u32 2147483647, %v508_v62 }
 0x2eb   :  { %v666_v0 = vsub.f32 1.0, %v665_v60  ;;  %v710_v1 = vmul.f32 %v663_v63, %v582_v53  ;;  %vm683_vm13 = vweird.f32 %v508_v62 }
 0x2ec   :  { %v690_v23 = vor.u32 1.1754944e-38, %v689_v15  ;;  %vm688_vm15 = vcmp.eq.f32.partialorder %v687_v17, 8.507059e+37 }
 0x2ed   :  { %v667_v3 = vmul.f32 %v1195_v58, %v666_v0  ;;  %1150 = vmatmul.msk.f32.gmra.mxu1 %vm158_vm2, %v710_v1 }
 0x2ef   :  { %v668_v6 = vadd.f32 %v1195_v58, %v667_v3 }
 0x2f0   :  { %v1197_v7 = vpop.eup %1196 }
 0x2f1   :  { %v679_v9 = vmul.f32 %v1197_v7, %v508_v62  ;;  %v672_v10 = vsel %vm671_vm10, %v1195_v58, %v668_v6  ;;  %v511_v11 = vpop.xlane.xlu0 %510  ;;  %vm684_vm12 = vweird.f32 %v1197_v7 }
 0x2f2   :  { %v677_v12 = vsel %vm674_vm11, %v676_v8, %v672_v10  ;;  %1198 = vrcp.f32 %v511_v11  ;;  %v588_v21 = vpop.f32.mrf.mxu0  ;;  %vm685_vm14 = vmor %vm683_vm13, %vm684_vm12  ;;  %v703_v31 = vand.u32 2147483648, %v511_v11  ;;  %v701_v33 = vand.u32 2147483647, %v511_v11 }
 0x2f3   :  { %v680_v13 = vsub.f32 1.0, %v679_v9  ;;  %v711_v14 = vmul.f32 %v677_v12, %v585_v5  ;;  %vm697_vm1 = vweird.f32 %v511_v11  ;;  %v1218_v8 = vmov 4.0  }
 0x2f4   :  { %v704_v36 = vor.u32 1.1754944e-38, %v703_v31  ;;  %vm702_vm4 = vcmp.eq.f32.partialorder %v701_v33, 8.507059e+37  ;;  %1200 = vrcp.f32 %v1218_v8  ;;  %v1592_v8 = vld [vmem:[%s1678_s12] ss:$0 sm:$0xff] }
 0x2f5   :  { %v681_v16 = vmul.f32 %v1197_v7, %v680_v13  ;;  %1151 = vmatmul.msk.f32.gmra.mxu1 %vm158_vm2, %v711_v14 }
 0x2f7   :  { %v682_v19 = vadd.f32 %v1197_v7, %v681_v16 }
 0x2f8   :  { %v1199_v20 = vpop.eup %1198 }
 0x2f9   :  { %v693_v24 = vmul.f32 %v1199_v20, %v511_v11  ;;  %v686_v25 = vsel %vm685_vm14, %v1197_v7, %v682_v19  ;;  %vm698_vm0 = vweird.f32 %v1199_v20 }
 0x2fa   :  { %v691_v27 = vsel %vm688_vm15, %v690_v23, %v686_v25  ;;  %vm699_vm3 = vmor %vm697_vm1, %vm698_vm0  ;;  %v591_v38 = vpop.f32.mrf.mxu0  ;;  %v1201_v9 = vpop.eup %1200 }
 0x2fb   :  { %v694_v28 = vsub.f32 1.0, %v693_v24  ;;  %v712_v29 = vmul.f32 %v691_v27, %v588_v21  ;;  %v820_v10 = vmul.f32 4.0, %v1201_v9  ;;  %vm824_vm5 = vweird.f32 %v1201_v9 }
 0x2fd   :  { %v695_v32 = vmul.f32 %v1199_v20, %v694_v28  ;;  %1152 = vmatmul.msk.f32.gmra.mxu1 %vm158_vm2, %v712_v29 }
 0x2ff   :  { %v696_v34 = vadd.f32 %v1199_v20, %v695_v32 }
 0x301   :  { %v700_v37 = vsel %vm699_vm3, %v1199_v20, %v696_v34 }
 0x302   :  { %v705_v40 = vsel %vm702_vm4, %v704_v36, %v700_v37 }
 0x303   :  { %v713_v41 = vmul.f32 %v705_v40, %v591_v38 }
 0x305   :  { %1153 = vmatmul.msk.f32.gmra.mxu1 %vm158_vm2, %v713_v41 }
 0x344   :  { %v763_v44 = vpop.f32.mrf.mxu1 }
 0x345   :  { %v764_v45 = vadd.f32 %v1164_v42, %v763_v44 }
 0x347   :  { %v787_v46 = vadd.f32 %v764_v45, %v1363_v18 }
 0x349   :  { %v795_v48 = vsel %vm158_vm2, %v787_v46, 0.0 }
 0x34a   :  { %796 = vadd.xlane.f32.xlu1 %v795_v48 }
 0x34c   :  { %v766_v49 = vpop.f32.mrf.mxu1 }
 0x34d   :  { %v767_v50 = vadd.f32 %v1164_v42, %v766_v49 }
 0x34f   :  { %v788_v51 = vadd.f32 %v767_v50, %v1372_v22 }
 0x351   :  { %v798_v52 = vsel %vm158_vm2, %v788_v51, 0.0 }
 0x352   :  { %799 = vadd.xlane.f32.xlu2 %v798_v52 }
 0x354   :  { %v769_v53 = vpop.f32.mrf.mxu1 }
 0x355   :  { %v770_v54 = vadd.f32 %v1164_v42, %v769_v53 }
 0x357   :  { %v789_v55 = vadd.f32 %v770_v54, %v1381_v26 }
 0x359   :  { %v801_v56 = vsel %vm158_vm2, %v789_v55, 0.0 }
 0x35a   :  { %802 = vadd.xlane.f32.xlu2 %v801_v56 }
 0x35c   :  { %v772_v57 = vpop.f32.mrf.mxu1 }
 0x35d   :  { %v773_v63 = vadd.f32 %v1164_v42, %v772_v57 }
 0x35f   :  { %v790_v2 = vadd.f32 %v773_v63, %v1390_v30  ;;  %v821_v30 = vsub.f32 1.0, %v820_v10 }
 0x361   :  { %v804_v4 = vsel %vm158_vm2, %v790_v2, 0.0  ;;  %v822_v11 = vmul.f32 %v1201_v9, %v821_v30 }
 0x36a   :  { %v775_v58 = vpop.f32.mrf.mxu1 }
 0x36b   :  { %v776_v18 = vadd.f32 %v1164_v42, %v775_v58 }
 0x36d   :  { %v791_v59 = vadd.f32 %v776_v18, %v1403_v35 }
 0x36f   :  { %v807_v60 = vsel %vm158_vm2, %v791_v59, 0.0 }
 0x370   :  { %808 = vadd.xlane.f32.xlu0 %v807_v60 }
 0x372   :  { %v778_v61 = vpop.f32.mrf.mxu1 }
 0x373   :  { %v779_v22 = vadd.f32 %v1164_v42, %v778_v61 }
 0x375   :  { %v792_v62 = vadd.f32 %v779_v22, %v1412_v39 }
 0x377   :  { %v810_v0 = vsel %vm158_vm2, %v792_v62, 0.0 }
 0x378   :  { %811 = vadd.xlane.f32.xlu1 %v810_v0 }
 0x37a   :  { %v781_v26 = vpop.f32.mrf.mxu1 }
 0x37b   :  { %v782_v1 = vadd.f32 %v1164_v42, %v781_v26 }
 0x37d   :  { %v793_v3 = vadd.f32 %v782_v1, %v1421_v43  ;;  %v823_v43 = vadd.f32 %v1201_v9, %v822_v11  ;;  %v1598_v11 = vld [vmem:[%s1679_s13] ss:$0 sm:$0xff] }
 0x37f   :  { %v813_v35 = vsel %vm158_vm2, %v793_v3, 0.0  ;;  %v1536_v12 = vsel %vm824_vm5, %v1201_v9, %v823_v43 }
 0x380   :  { %805 = vadd.xlane.f32.xlu1 %v804_v4  ;;  %814 = vadd.xlane.f32.xlu0 %v813_v35 }
 0x382   :  { %v784_v5 = vpop.f32.mrf.mxu1 }
 0x383   :  { %v785_v6 = vadd.f32 %v1164_v42, %v784_v5 }
 0x385   :  { %v794_v39 = vadd.f32 %v785_v6, %v1430_v47 }
 0x387   :  { %v816_v7 = vsel %vm158_vm2, %v794_v39, 0.0 }
 0x388   :  { %817 = vadd.xlane.f32.xlu2 %v816_v7 }
 0x3bd   :  { %v797_v13 = vpop.xlane.xlu1 %796 }
 0x3be   :  { %v826_v14 = vmul.f32 %v1536_v12, %v797_v13 }
 0x3c0   :  { %v1539_v15 = vsub.f32 %v787_v46, %v826_v14 }
 0x3c2   :  { %v842_v47 = vmul.f32 %v1539_v15, %v1539_v15 }
 0x3c4   :  { %v850_v16 = vsel %vm158_vm2, %v842_v47, 0.0  ;;  %v1604_v47 = vld [vmem:[%s1680_s14] sm:$0xff] }
 0x3c5   :  { %v800_v17 = vpop.xlane.xlu2 %799  ;;  %851 = vadd.xlane.f32.xlu0 %v850_v16 }
 0x3c6   :  { %v827_v19 = vmul.f32 %v1536_v12, %v800_v17 }
 0x3c8   :  { %v1545_v20 = vsub.f32 %v788_v51, %v827_v19 }
 0x3ca   :  { %v843_v21 = vmul.f32 %v1545_v20, %v1545_v20 }
 0x3cc   :  { %v853_v23 = vsel %vm158_vm2, %v843_v21, 0.0 }
 0x3cd   :  { %v803_v24 = vpop.xlane.xlu2 %802  ;;  %854 = vadd.xlane.f32.xlu1 %v853_v23 }
 0x3ce   :  { %v828_v25 = vmul.f32 %v1536_v12, %v803_v24 }
 0x3d0   :  { %v1551_v27 = vsub.f32 %v789_v55, %v828_v25 }
 0x3d2   :  { %v844_v28 = vmul.f32 %v1551_v27, %v1551_v27 }
 0x3d4   :  { %v856_v29 = vsel %vm158_vm2, %v844_v28, 0.0 }
 0x3d5   :  { %857 = vadd.xlane.f32.xlu1 %v856_v29 }
 0x3e3   :  { %v809_v31 = vpop.xlane.xlu0 %808 }
 0x3e4   :  { %v830_v32 = vmul.f32 %v1536_v12, %v809_v31 }
 0x3e6   :  { %v1557_v33 = vsub.f32 %v791_v59, %v830_v32 }
 0x3e8   :  { %v846_v34 = vmul.f32 %v1557_v33, %v1557_v33 }
 0x3ea   :  { %v862_v36 = vsel %vm158_vm2, %v846_v34, 0.0  ;;  %v1614_v34 = vld [vmem:[%s1680_s14 + $0x8] sm:$0xff] }
 0x3eb   :  { %v812_v37 = vpop.xlane.xlu1 %811  ;;  %863 = vadd.xlane.f32.xlu2 %v862_v36 }
 0x3ec   :  { %v831_v38 = vmul.f32 %v1536_v12, %v812_v37 }
 0x3ee   :  { %v1563_v40 = vsub.f32 %v792_v62, %v831_v38 }
 0x3f0   :  { %v847_v41 = vmul.f32 %v1563_v40, %v1563_v40 }
 0x3f2   :  { %v865_v42 = vsel %vm158_vm2, %v847_v41, 0.0 }
 0x3f3   :  { %v806_v44 = vpop.xlane.xlu1 %805  ;;  %866 = vadd.xlane.f32.xlu0 %v865_v42  ;;  %v815_v45 = vpop.xlane.xlu0 %814 }
 0x3f4   :  { %v829_v46 = vmul.f32 %v1536_v12, %v806_v44  ;;  %v832_v48 = vmul.f32 %v1536_v12, %v815_v45 }
 0x3f6   :  { %v1570_v49 = vsub.f32 %v790_v2, %v829_v46  ;;  %v1572_v50 = vsub.f32 %v793_v3, %v832_v48 }
 0x3f8   :  { %v845_v51 = vmul.f32 %v1570_v49, %v1570_v49  ;;  %v848_v52 = vmul.f32 %v1572_v50, %v1572_v50 }
 0x3fa   :  { %v859_v53 = vsel %vm158_vm2, %v845_v51, 0.0  ;;  %v868_v54 = vsel %vm158_vm2, %v848_v52, 0.0  ;;  %v1625_v51 = vld [vmem:[%s1680_s14 + $0x10] sm:$0xff] }
 0x3fb   :  { %860 = vadd.xlane.f32.xlu0 %v859_v53  ;;  %v818_v55 = vpop.xlane.xlu2 %817  ;;  %869 = vadd.xlane.f32.xlu2 %v868_v54 }
 0x3fc   :  { %v833_v56 = vmul.f32 %v1536_v12, %v818_v55 }
 0x3fe   :  { %v1581_v57 = vsub.f32 %v794_v39, %v833_v56 }
 0x400   :  { %v849_v58 = vmul.f32 %v1581_v57, %v1581_v57 }
 0x402   :  { %v871_v18 = vsel %vm158_vm2, %v849_v58, 0.0 }
 0x403   :  { %872 = vadd.xlane.f32.xlu1 %v871_v18 }
 0x438   :  { %v852_v59 = vpop.xlane.xlu0 %851 }
 0x439   :  { %v874_v60 = vmul.f32 %v852_v59, %v1536_v12 }
 0x43b   :  { %v883_v61 = vadd.f32 1e-12, %v874_v60 }
 0x43d   :  { %1202 = vrsqrt.f32 %v883_v61  ;;  %vm897_vm7 = vweird.f32 %v883_v61 }
 0x440   :  { %v855_v22 = vpop.xlane.xlu1 %854 }
 0x441   :  { %v875_v62 = vmul.f32 %v855_v22, %v1536_v12 }
 0x443   :  { %v1203_v63 = vpop.eup %1202  ;;  %v884_v0 = vadd.f32 1e-12, %v875_v62 }
 0x444   :  { %v892_v26 = vmul.f32 %v1203_v63, %v883_v61  ;;  %vm898_vm6 = vweird.f32 %v1203_v63 }
 0x445   :  { %1204 = vrsqrt.f32 %v884_v0  ;;  %vm899_vm8 = vmor %vm897_vm7, %vm898_vm6  ;;  %vm907_vm10 = vweird.f32 %v884_v0 }
 0x446   :  { %v893_v1 = vmul.f32 %v1203_v63, %v892_v26 }
 0x448   :  { %v894_v2 = vmul.f32 0.5, %v893_v1  ;;  %v858_v3 = vpop.xlane.xlu1 %857 }
 0x449   :  { %v876_v4 = vmul.f32 %v858_v3, %v1536_v12 }
 0x44a   :  { %v895_v35 = vsub.f32 1.5, %v894_v2 }
 0x44b   :  { %v1205_v5 = vpop.eup %1204  ;;  %v885_v6 = vadd.f32 1e-12, %v876_v4 }
 0x44c   :  { %v896_v39 = vmul.f32 %v1203_v63, %v895_v35  ;;  %v902_v7 = vmul.f32 %v1205_v5, %v884_v0  ;;  %vm908_vm9 = vweird.f32 %v1205_v5 }
 0x44d   :  { %1206 = vrsqrt.f32 %v885_v6  ;;  %vm909_vm11 = vmor %vm907_vm10, %vm908_vm9  ;;  %vm917_vm13 = vweird.f32 %v885_v6 }
 0x44e   :  { %v900_v9 = vsel %vm899_vm8, %v1203_v63, %v896_v39  ;;  %v903_v10 = vmul.f32 %v1205_v5, %v902_v7 }
 0x44f   :  { %v971_v30 = vmul.f32 %v900_v9, %v1539_v15 }
 0x450   :  { %v904_v43 = vmul.f32 0.5, %v903_v10 }
 0x451   :  { %v982_v13 = vmul.f32 %v1592_v8, %v971_v30 }
 0x452   :  { %v905_v14 = vsub.f32 1.5, %v904_v43 }
 0x453   :  { %v1207_v16 = vpop.eup %1206  ;;  %v994_v17 = vadd.f32 %v1598_v11, %v982_v13 }
 0x454   :  { %v906_v19 = vmul.f32 %v1205_v5, %v905_v14  ;;  %v912_v15 = vmul.f32 %v1207_v16, %v885_v6  ;;  %vm918_vm12 = vweird.f32 %v1207_v16 }
 0x455   :  { %v1006_v21 = vmul.f32 %v1604_v47, %v994_v17  ;;  %vm919_vm14 = vmor %vm917_vm13, %vm918_vm12 }
 0x456   :  { %v910_v23 = vsel %vm909_vm11, %v1205_v5, %v906_v19  ;;  %v913_v24 = vmul.f32 %v1207_v16, %v912_v15 }
 0x457   :  { %v1014_v25 = vsel %vm158_vm2, %v1006_v21, 0.0  ;;  %v972_v28 = vmul.f32 %v910_v23, %v1545_v20 }
 0x458   :  { %v914_v29 = vmul.f32 0.5, %v913_v24  ;;  %1015 = vadd.xlane.f32.xlu2 %v1014_v25 }
 0x459   :  { %v983_v31 = vmul.f32 %v1592_v8, %v972_v28 }
 0x45a   :  { %v915_v32 = vsub.f32 1.5, %v914_v29 }
 0x45b   :  { %v995_v36 = vadd.f32 %v1598_v11, %v983_v31 }
 0x45c   :  { %v916_v37 = vmul.f32 %v1207_v16, %v915_v32 }
 0x45d   :  { %v1007_v38 = vmul.f32 %v1614_v34, %v995_v36 }
 0x45e   :  { %v920_v41 = vsel %vm919_vm14, %v1207_v16, %v916_v37  ;;  %v864_v20 = vpop.xlane.xlu2 %863 }
 0x45f   :  { %v878_v42 = vmul.f32 %v864_v20, %v1536_v12  ;;  %v1017_v44 = vsel %vm158_vm2, %v1007_v38, 0.0  ;;  %v973_v45 = vmul.f32 %v920_v41, %v1551_v27 }
 0x460   :  { %1018 = vadd.xlane.f32.xlu0 %v1017_v44 }
 0x461   :  { %v887_v46 = vadd.f32 1e-12, %v878_v42  ;;  %v984_v48 = vmul.f32 %v1592_v8, %v973_v45 }
 0x463   :  { %1208 = vrsqrt.f32 %v887_v46  ;;  %v996_v52 = vadd.f32 %v1598_v11, %v984_v48  ;;  %vm937_vm0 = vweird.f32 %v887_v46 }
 0x465   :  { %v1008_v53 = vmul.f32 %v1625_v51, %v996_v52 }
 0x466   :  { %v867_v54 = vpop.xlane.xlu0 %866 }
 0x467   :  { %v879_v55 = vmul.f32 %v867_v54, %v1536_v12  ;;  %v1020_v56 = vsel %vm158_vm2, %v1008_v53, 0.0 }
 0x468   :  { %1021 = vadd.xlane.f32.xlu0 %v1020_v56 }
 0x469   :  { %v1209_v27 = vpop.eup %1208  ;;  %v888_v58 = vadd.f32 1e-12, %v879_v55 }
 0x46a   :  { %v932_v18 = vmul.f32 %v1209_v27, %v887_v46  ;;  %vm938_vm15 = vweird.f32 %v1209_v27 }
 0x46b   :  { %1210 = vrsqrt.f32 %v888_v58  ;;  %vm939_vm1 = vmor %vm937_vm0, %vm938_vm15  ;;  %vm947_vm4 = vweird.f32 %v888_v58  ;;  %vm1055_vm15 = vcmask 195712   ;;  %vm1059_vm0 = vcmask 261312  }
 0x46c   :  { %v933_v59 = vmul.f32 %v1209_v27, %v932_v18 }
 0x46e   :  { %v934_v60 = vmul.f32 0.5, %v933_v59  ;;  %v870_v61 = vpop.xlane.xlu2 %869  ;;  %v861_v22 = vpop.xlane.xlu0 %860 }
 0x46f   :  { %v880_v62 = vmul.f32 %v870_v61, %v1536_v12  ;;  %v877_v63 = vmul.f32 %v861_v22, %v1536_v12 }
 0x470   :  { %v935_v0 = vsub.f32 1.5, %v934_v60 }
 0x471   :  { %v1211_v26 = vpop.eup %1210  ;;  %v889_v1 = vadd.f32 1e-12, %v880_v62  ;;  %v886_v2 = vadd.f32 1e-12, %v877_v63 }
 0x472   :  { %v936_v3 = vmul.f32 %v1209_v27, %v935_v0  ;;  %v942_v4 = vmul.f32 %v1211_v26, %v888_v58  ;;  %vm948_vm3 = vweird.f32 %v1211_v26 }
 0x473   :  { %1212 = vrsqrt.f32 %v889_v1  ;;  %vm949_vm5 = vmor %vm947_vm4, %vm948_vm3  ;;  %vm957_vm8 = vweird.f32 %v889_v1  ;;  %vm927_vm10 = vweird.f32 %v886_v2  ;;  %vm1071_vm3 = vcmask 254976  }
 0x474   :  { %v940_v35 = vsel %vm939_vm1, %v1209_v27, %v936_v3  ;;  %v943_v5 = vmul.f32 %v1211_v26, %v942_v4  ;;  %1214 = vrsqrt.f32 %v886_v2  ;;  %v1005_v27 = vld [vmem:[%s1680_s14 + $0x18] sm:$0xff]  ;;  %v1046_v3 = vlaneseq }
 0x475   :  { %v975_v6 = vmul.f32 %v940_v35, %v1557_v33  ;;  %vm1068_vm1 = vcmask 1041409   ;;  %vm1080_vm4 = vcmask 1024  }
 0x476   :  { %v944_v39 = vmul.f32 0.5, %v943_v5  ;;  %v873_v7 = vpop.xlane.xlu1 %872  ;;  %v1047_v35 = vand.u32 127, %v1046_v3 }
 0x477   :  { %v881_v9 = vmul.f32 %v873_v7, %v1536_v12  ;;  %v986_v10 = vmul.f32 %v1592_v8, %v975_v6 }
 0x478   :  { %v945_v30 = vsub.f32 1.5, %v944_v39  ;;  %v1049_v6 = vadd.s32 4294967288, %v1047_v35 }
 0x479   :  { %v1213_v43 = vpop.eup %1212  ;;  %v890_v13 = vadd.f32 1e-12, %v881_v9  ;;  %v998_v14 = vadd.f32 %v1598_v11, %v986_v10 }
 0x47a   :  { %v1215_v16 = vpop.eup %1214  ;;  %v946_v17 = vmul.f32 %v1211_v26, %v945_v30  ;;  %v952_v19 = vmul.f32 %v1213_v43, %v889_v1  ;;  %vm958_vm6 = vweird.f32 %v1213_v43 }
 0x47b   :  { %v922_v15 = vmul.f32 %v1215_v16, %v886_v2  ;;  %1216 = vrsqrt.f32 %v890_v13  ;;  %v1010_v23 = vmul.f32 %v1604_v47, %v998_v14  ;;  %vm928_vm7 = vweird.f32 %v1215_v16  ;;  %vm959_vm9 = vmor %vm957_vm8, %vm958_vm6 }
 0x47c   :  { %v950_v33 = vsel %vm949_vm5, %v1211_v26, %v946_v17  ;;  %v953_v21 = vmul.f32 %v1213_v43, %v952_v19  ;;  %vm929_vm11 = vmor %vm927_vm10, %vm928_vm7  ;;  %vm967_vm13 = vweird.f32 %v890_v13 }
 0x47d   :  { %v923_v12 = vmul.f32 %v1215_v16, %v922_v15  ;;  %v976_v24 = vmul.f32 %v950_v33, %v1563_v40  ;;  %v1026_v28 = vsel %vm158_vm2, %v1010_v23, 0.0 }
 0x47e   :  { %v954_v25 = vmul.f32 0.5, %v953_v21  ;;  %1027 = vadd.xlane.f32.xlu1 %v1026_v28 }
 0x47f   :  { %v924_v29 = vmul.f32 0.5, %v923_v12  ;;  %v987_v31 = vmul.f32 %v1592_v8, %v976_v24 }
 0x480   :  { %v955_v32 = vsub.f32 1.5, %v954_v25 }
 0x481   :  { %v1217_v36 = vpop.eup %1216  ;;  %v925_v37 = vsub.f32 1.5, %v924_v29  ;;  %v999_v38 = vadd.f32 %v1598_v11, %v987_v31 }
 0x482   :  { %v956_v41 = vmul.f32 %v1213_v43, %v955_v32  ;;  %v962_v47 = vmul.f32 %v1217_v36, %v890_v13  ;;  %vm968_vm12 = vweird.f32 %v1217_v36 }
 0x483   :  { %v926_v20 = vmul.f32 %v1215_v16, %v925_v37  ;;  %v1011_v40 = vmul.f32 %v1614_v34, %v999_v38  ;;  %vm969_vm14 = vmor %vm967_vm13, %vm968_vm12 }
 0x484   :  { %v960_v42 = vsel %vm959_vm9, %v1213_v43, %v956_v41  ;;  %v963_v44 = vmul.f32 %v1217_v36, %v962_v47 }
 0x485   :  { %v930_v45 = vsel %vm929_vm11, %v1215_v16, %v926_v20  ;;  %v1029_v46 = vsel %vm158_vm2, %v1011_v40, 0.0  ;;  %v977_v48 = vmul.f32 %v960_v42, %v1572_v50 }
 0x486   :  { %v964_v52 = vmul.f32 0.5, %v963_v44  ;;  %1030 = vadd.xlane.f32.xlu2 %v1029_v46  ;;  %v974_v53 = vmul.f32 %v930_v45, %v1570_v49 }
 0x487   :  { %v988_v54 = vmul.f32 %v1592_v8, %v977_v48 }
 0x488   :  { %v965_v55 = vsub.f32 1.5, %v964_v52  ;;  %v985_v56 = vmul.f32 %v1592_v8, %v974_v53 }
 0x489   :  { %v1000_v34 = vadd.f32 %v1598_v11, %v988_v54 }
 0x48a   :  { %v966_v58 = vmul.f32 %v1217_v36, %v965_v55  ;;  %v997_v50 = vadd.f32 %v1598_v11, %v985_v56 }
 0x48b   :  { %v1012_v18 = vmul.f32 %v1625_v51, %v1000_v34  ;;  %v21_v51 = vstv %s1681_s15 }
 0x48c   :  { %v970_v49 = vsel %vm969_vm14, %v1217_v36, %v966_v58  ;;  %v1009_v59 = vmul.f32 %v1005_v27, %v997_v50  ;;  %22 = vst [vmem:[#allocation2] sm:$0x1] %v21_v51 }
 0x48d   :  { %v1032_v60 = vsel %vm158_vm2, %v1012_v18, 0.0  ;;  %v978_v61 = vmul.f32 %v970_v49, %v1581_v57 }
 0x48e   :  { %1033 = vadd.xlane.f32.xlu1 %v1032_v60  ;;  %v1023_v22 = vsel %vm158_vm2, %v1009_v59, 0.0 }
 0x48f   :  { %1024 = vadd.xlane.f32.xlu2 %v1023_v22  ;;  %v989_v62 = vmul.f32 %v1592_v8, %v978_v61  ;;  %v1053_v8 = vadd.s32 4294967280, %v1047_v35 }
 0x491   :  { %v1001_v63 = vadd.f32 %v1598_v11, %v989_v62  ;;  %v1057_v11 = vadd.s32 4294967272, %v1047_v35 }
 0x493   :  { %v1013_v0 = vmul.f32 %v1005_v27, %v1001_v63  ;;  %v1167_v29 = vld [vmem:[#allocation2] ss:$0 sm:$0xff] }
 0x495   :  { %v1035_v26 = vsel %vm158_vm2, %v1013_v0, 0.0  ;;  %vm1051_vm2 = vcmask 130112  }
 0x496   :  { %1036 = vadd.xlane.f32.xlu0 %v1035_v26 }
 0x4cb   :  { %v1016_v1 = vpop.xlane.xlu2 %1015 }
 0x4cc   :  { %v1048_v13 = vperm.slane %v1016_v1, %v1047_v35 }
 0x4d3   :  { %v1019_v2 = vpop.xlane.xlu0 %1018 }
 0x4d4   :  { %v1050_v9 = vperm.slane %v1019_v2, %v1049_v6 }
 0x4d6   :  { %v1052_v19 = vsel %vm1051_vm2, %v1050_v9, %v1048_v13 }
 0x4db   :  { %v1022_v5 = vpop.xlane.xlu0 %1021 }
 0x4dc   :  { %v1054_v30 = vperm.slane %v1022_v5, %v1053_v8 }
 0x4de   :  { %v1056_v21 = vsel %vm1055_vm15, %v1054_v30, %v1052_v19 }
 0x4f1   :  { %v1028_v4 = vpop.xlane.xlu1 %1027 }
 0x4f2   :  { %v1061_v14 = vperm.slane %v1028_v4, %v1047_v35 }
 0x4f9   :  { %v1031_v57 = vpop.xlane.xlu2 %1030 }
 0x4fa   :  { %v1062_v10 = vperm.slane %v1031_v57, %v1049_v6 }
 0x4fc   :  { %v1063_v15 = vsel %vm1051_vm2, %v1062_v10, %v1061_v14 }
 0x501   :  { %v1034_v39 = vpop.xlane.xlu1 %1033 }
 0x502   :  { %v1025_v7 = vpop.xlane.xlu2 %1024  ;;  %v1064_v43 = vperm.slane %v1034_v39, %v1053_v8 }
 0x503   :  { %v1058_v16 = vperm.slane %v1025_v7, %v1057_v11 }
 0x504   :  { %v1065_v23 = vsel %vm1055_vm15, %v1064_v43, %v1063_v15 }
 0x505   :  { %v1060_v12 = vsel %vm1059_vm0, %v1058_v16, %v1056_v21 }
 0x509   :  { %v1037_v17 = vpop.xlane.xlu0 %1036 }
 0x50a   :  { %v1066_v33 = vperm.slane %v1037_v17, %v1057_v11 }
 0x50c   :  { %v1067_v24 = vsel %vm1059_vm0, %v1066_v33, %v1065_v23 }
 0x50d   :  { %v1069_v25 = vsel %vm1068_vm1, %v1067_v24, %v1060_v12 }
 0x50e   :  { %v1072_v28 = vsel %vm1071_vm3, %v1069_v25, 0.0 }
 0x50f   :  { %1073 = vadd.xlane.f32.xlu1 %v1072_v28 }
 0x582   :  { %v1074_v31 = vpop.xlane.xlu1 %1073 }
 0x583   :  { %v1079_v32 = vadd.f32 %v1167_v29, %v1074_v31 }
 0x585   :  { %1081 = vst.msk [vmem:[%s1682_s16] sm:$0x3] %vm1080_vm4, %v1079_v32 }

</bundles_post_ra>
